<compile_context>
chip_gen: v7x
topology: tpu7x:2x2x1
jax: 0.10.0
libtpu: 0.0.40
codegen_flags: <defaults>
</compile_context>

<pallas_src>
import functools

import jax
import jax.numpy as jnp
from jax.experimental import pallas as pl
from jax.experimental.pallas import tpu as pltpu


def _ce_label_smooth_kernel(x_ref, t_ref, o_ref, acc_ref, *,
                            epsilon, num_classes, tile_n, n_rows):
    pid = pl.program_id(0)

    # --- init accumulator on the first tile -------------------------------
    @pl.when(pid == 0)
    def _():
        acc_ref[...] = jnp.zeros_like(acc_ref)

    # --- load tile (native dtype -> f32 inside the kernel) -----------------
    x = x_ref[...].astype(jnp.float32)              # (TILE_N, C) logits
    t = t_ref[...]                                  # (TILE_N, 1) int32 labels

    # Row-validity mask for the (possibly partial) last tile.
    row_ids = pid * tile_n + jax.lax.broadcasted_iota(jnp.int32, (tile_n, 1), 0)
    row_valid = row_ids < n_rows                    # (TILE_N, 1) bool
    # Sanitize padded rows so exp()/max() stay finite.
    x = jnp.where(row_valid, x, 0.0)

    # --- numerically stable log-softmax pieces (no full log_probs product) --
    m = jnp.max(x, axis=1, keepdims=True)           # (TILE_N, 1)
    shifted = x - m                                 # (TILE_N, C)
    lse = jnp.log(jnp.sum(jnp.exp(shifted), axis=1, keepdims=True))  # (TILE_N,1)
    row_sum_shifted = jnp.sum(shifted, axis=1, keepdims=True)        # (TILE_N,1)

    # shifted[row, t[row]] via lane-axis iota compare (scatter/gather-free).
    class_ids = jax.lax.broadcasted_iota(jnp.int32, x.shape, 1)      # (TILE_N,C)
    shifted_t = jnp.sum(jnp.where(class_ids == t, shifted, 0.0),
                        axis=1, keepdims=True)                       # (TILE_N,1)

    # Per-row loss:
    #   (1-eps) * (lse - shifted_t) + (eps/C) * (C*lse - sum_c shifted)
    c_f = jnp.float32(num_classes)
    row_loss = ((1.0 - epsilon) * (lse - shifted_t)
                + (epsilon / c_f) * (c_f * lse - row_sum_shifted))   # (TILE_N,1)
    row_loss = jnp.where(row_valid, row_loss, 0.0)

    # Accumulate the per-tile partial sum (pure accumulate in the hot loop).
    acc_ref[...] += jnp.sum(row_loss, axis=0, keepdims=True)

    # --- finalize on the last tile: divide by the true N once and store ----
    @pl.when(pid == pl.num_programs(0) - 1)
    def _():
        o_ref[...] = (acc_ref[...] * jnp.float32(1.0 / n_rows)).astype(o_ref.dtype)


def _pick_tile_n(n, c, itemsize, input_budget_bytes=40 << 20):
    """Largest multiple-of-8 batch tile whose double-buffered logits fit budget."""
    per_row = 2 * c * itemsize + 2 * 4          # 2x logits row + 2x int32 label
    max_rows = max(8, input_budget_bytes // max(per_row, 1))
    tile_n = min(512, max_rows, n)
    tile_n = max(8, (tile_n // 8) * 8)
    return int(tile_n)


def cross_entropy_label_smooth(inputs, targets, num_classes, epsilon=0.1,
                               tile_n=None):
    """inputs: (N, C) logits (any float dtype); targets: (N,) int labels -> scalar."""
    n, c = inputs.shape
    assert c == num_classes
    t2d = targets.reshape(n, 1).astype(jnp.int32)

    itemsize = jnp.dtype(inputs.dtype).itemsize
    if tile_n is None:
        tile_n = _pick_tile_n(n, c, itemsize)
    num_tiles = pl.cdiv(n, tile_n)

    # Explicit VMEM budget: double-buffered inputs + scratch + headroom,
    # clamped to fit every generation (v7x has only 64 MiB physical VMEM).
    needed = 2 * tile_n * c * itemsize + 2 * tile_n * 4 + (1 << 20)
    vmem_limit = int(min(max(2 * needed, 16 << 20), 48 << 20))

    kernel = functools.partial(
        _ce_label_smooth_kernel,
        epsilon=float(epsilon),
        num_classes=int(num_classes),
        tile_n=int(tile_n),
        n_rows=int(n),
    )

    out = pl.pallas_call(
        kernel,
        out_shape=jax.ShapeDtypeStruct((1, 1), jnp.float32),
        grid=(num_tiles,),
        in_specs=[
            pl.BlockSpec((tile_n, c), lambda i: (i, 0)),   # logits tile (native dtype)
            pl.BlockSpec((tile_n, 1), lambda i: (i, 0)),   # labels tile
        ],
        out_specs=pl.BlockSpec((1, 1), lambda i: (0, 0)),  # single scalar output
        scratch_shapes=[pltpu.VMEM((1, 1), jnp.float32)],  # running loss accumulator
        compiler_params=pltpu.CompilerParams(
            dimension_semantics=("arbitrary",),            # accumulator axis
            vmem_limit_bytes=vmem_limit,
        ),
    )(inputs, t2d)                                         # no wrapper up-cast
    return out[0, 0]


def _reference(logits_f32, labels, num_classes, epsilon):
    log_probs = jax.nn.log_softmax(logits_f32, axis=1)
    onehot = jax.nn.one_hot(labels, num_classes, dtype=jnp.float32)
    smooth = (1.0 - epsilon) * onehot + epsilon / num_classes
    return jnp.sum(jnp.mean(-smooth * log_probs, axis=0))


if __name__ == "__main__":
    # Small deterministic example; batch chosen NOT a multiple of the tile to
    # exercise the partial-tile masking path (grid = 3 tiles of 8 rows).
    num_classes = 16
    batch = 20
    epsilon = 0.1

    key = jax.random.PRNGKey(0)
    k1, k2 = jax.random.split(key)
    logits = jax.random.normal(k1, (batch, num_classes), dtype=jnp.float32)
    labels = jax.random.randint(k2, (batch,), 0, num_classes, dtype=jnp.int32)

    # f32 path.
    loss = cross_entropy_label_smooth(logits, labels, num_classes, epsilon,
                                      tile_n=8)
    loss = jax.block_until_ready(loss)
    ref = _reference(logits, labels, num_classes, epsilon)
    assert jnp.allclose(loss, ref, atol=1e-5, rtol=1e-5), (loss, ref)

    # bf16 path: native-dtype DMA, f32 math inside the kernel.
    logits_bf16 = logits.astype(jnp.bfloat16)
    loss_bf16 = cross_entropy_label_smooth(logits_bf16, labels, num_classes,
                                           epsilon, tile_n=8)
    loss_bf16 = jax.block_until_ready(loss_bf16)
    ref_bf16 = _reference(logits_bf16.astype(jnp.float32), labels,
                          num_classes, epsilon)
    assert jnp.allclose(loss_bf16, ref_bf16, atol=1e-3, rtol=1e-3), (
        loss_bf16, ref_bf16)

    print("KERNEL_OK")
</pallas_src>

<mosaic_0001>
module attributes {stable_mosaic.version = 11 : i64} {
  func.func @_ce_label_smooth_kernel(%arg0: i32, %arg1: memref<8x16xf32, #tpu.memory_space<vmem>>, %arg2: memref<8x1xi32, #tpu.memory_space<vmem>>, %arg3: memref<1x1xf32, #tpu.memory_space<vmem>>, %arg4: memref<1x1xf32, #tpu.memory_space<vmem>>) attributes {dimension_semantics = [#tpu.dimension_semantics<arbitrary>], iteration_bounds = array<i64: 3>, scalar_prefetch = 0 : i64, scratch_operands = 1 : i64, tpu.core_type = #tpu.core_type<tc>, window_params = [{transform_indices = @transform_0, window_bounds = array<i64: 8, 16>}, {transform_indices = @transform_1, window_bounds = array<i64: 8, 1>}, {pipeline_mode = #tpu.pipeline_mode<synchronous>, transform_indices = @transform_2, window_bounds = array<i64: 1, 1>}]} {
    %c0_i32 = arith.constant 0 : i32
    %0 = arith.cmpi eq, %arg0, %c0_i32 : i32
    %1 = arith.extui %0 : i1 to i32
    %c0_i32_0 = arith.constant 0 : i32
    %2 = arith.cmpi ne, %1, %c0_i32_0 : i32
    scf.if %2 {
      %cst_20 = arith.constant 0.000000e+00 : f32
      %52 = vector.broadcast %cst_20 : f32 to vector<1x1xf32>
      %c0_21 = arith.constant 0 : index
      %c0_22 = arith.constant 0 : index
      %53 = vector.load %arg4[%c0_21, %c0_22] : memref<1x1xf32, #tpu.memory_space<vmem>>, vector<1x1xf32>
      tpu.vector_store %arg4[%c0_21, %c0_22], %52 {strides = array<i32>} : memref<1x1xf32, #tpu.memory_space<vmem>>, vector<1x1xf32>,
    } else {
    }
    %c0 = arith.constant 0 : index
    %c0_1 = arith.constant 0 : index
    %3 = vector.load %arg1[%c0, %c0_1] : memref<8x16xf32, #tpu.memory_space<vmem>>, vector<8x16xf32>
    %c0_2 = arith.constant 0 : index
    %c0_3 = arith.constant 0 : index
    %4 = vector.load %arg2[%c0_2, %c0_3] : memref<8x1xi32, #tpu.memory_space<vmem>>, vector<8x1xi32>
    %c8_i32 = arith.constant 8 : i32
    %5 = arith.muli %arg0, %c8_i32 : i32
    %6 = tpu.iota {dimensions = array<i32: 0>} : vector<8x1xi32>
    %7 = vector.broadcast %5 : i32 to vector<8x1xi32>
    %8 = arith.addi %7, %6 : vector<8x1xi32>
    %c20_i32 = arith.constant 20 : i32
    %9 = vector.broadcast %c20_i32 : i32 to vector<8x1xi32>
    %10 = arith.cmpi slt, %8, %9 : vector<8x1xi32>
    %cst = arith.constant 0.000000e+00 : f32
    %11 = vector.shape_cast %10 : vector<8x1xi1> to vector<8x1xi1>
    %12 = vector.broadcast %11 : vector<8x1xi1> to vector<8x16xi1>
    %13 = vector.broadcast %cst : f32 to vector<8x16xf32>
    %14 = arith.select %12, %3, %13 : vector<8x16xi1>, vector<8x16xf32>
    %cst_4 = arith.constant dense<0xFF800000> : vector<8xf32>
    %15 = vector.multi_reduction <maximumf>, %14, %cst_4 [1] : vector<8x16xf32> to vector<8xf32>
    %16 = vector.shape_cast %15 : vector<8xf32> to vector<8x1xf32>
    %17 = vector.broadcast %16 : vector<8x1xf32> to vector<8x16xf32>
    %18 = arith.subf %14, %17 : vector<8x16xf32>
    %19 = math.exp %18 : vector<8x16xf32>
    %cst_5 = arith.constant dense<0.000000e+00> : vector<8xf32>
    %20 = vector.multi_reduction <add>, %19, %cst_5 [1] : vector<8x16xf32> to vector<8xf32>
    %21 = vector.shape_cast %20 : vector<8xf32> to vector<8x1xf32>
    %22 = math.log %21 : vector<8x1xf32>
    %cst_6 = arith.constant dense<0.000000e+00> : vector<8xf32>
    %23 = vector.multi_reduction <add>, %18, %cst_6 [1] : vector<8x16xf32> to vector<8xf32>
    %24 = vector.shape_cast %23 : vector<8xf32> to vector<8x1xf32>
    %25 = tpu.iota {dimensions = array<i32: 1>} : vector<8x16xi32>
    %26 = vector.broadcast %4 : vector<8x1xi32> to vector<8x16xi32>
    %27 = arith.cmpi eq, %25, %26 : vector<8x16xi32>
    %cst_7 = arith.constant 0.000000e+00 : f32
    %28 = vector.broadcast %cst_7 : f32 to vector<8x16xf32>
    %29 = arith.select %27, %18, %28 : vector<8x16xi1>, vector<8x16xf32>
    %cst_8 = arith.constant dense<0.000000e+00> : vector<8xf32>
    %30 = vector.multi_reduction <add>, %29, %cst_8 [1] : vector<8x16xf32> to vector<8xf32>
    %31 = vector.shape_cast %30 : vector<8xf32> to vector<8x1xf32>
    %32 = arith.subf %22, %31 : vector<8x1xf32>
    %cst_9 = arith.constant 0.899999976 : f32
    %33 = vector.broadcast %cst_9 : f32 to vector<8x1xf32>
    %34 = arith.mulf %33, %32 : vector<8x1xf32>
    %cst_10 = arith.constant 1.000000e-01 : f32
    %cst_11 = arith.constant 1.600000e+01 : f32
    %35 = arith.divf %cst_10, %cst_11 : f32
    %cst_12 = arith.constant 1.600000e+01 : f32
    %36 = vector.broadcast %cst_12 : f32 to vector<8x1xf32>
    %37 = arith.mulf %36, %22 : vector<8x1xf32>
    %38 = arith.subf %37, %24 : vector<8x1xf32>
    %39 = vector.broadcast %35 : f32 to vector<8x1xf32>
    %40 = arith.mulf %39, %38 : vector<8x1xf32>
    %41 = arith.addf %34, %40 : vector<8x1xf32>
    %cst_13 = arith.constant 0.000000e+00 : f32
    %42 = vector.broadcast %cst_13 : f32 to vector<8x1xf32>
    %43 = arith.select %10, %41, %42 : vector<8x1xi1>, vector<8x1xf32>
    %c0_14 = arith.constant 0 : index
    %c0_15 = arith.constant 0 : index
    %44 = vector.load %arg4[%c0_14, %c0_15] : memref<1x1xf32, #tpu.memory_space<vmem>>, vector<1x1xf32>
    %cst_16 = arith.constant dense<0.000000e+00> : vector<1xf32>
    %45 = vector.multi_reduction <add>, %43, %cst_16 [0] : vector<8x1xf32> to vector<1xf32>
    %46 = vector.shape_cast %45 : vector<1xf32> to vector<1x1xf32>
    %47 = arith.addf %44, %46 : vector<1x1xf32>
    %c0_17 = arith.constant 0 : index
    %c0_18 = arith.constant 0 : index
    %48 = vector.load %arg4[%c0_17, %c0_18] : memref<1x1xf32, #tpu.memory_space<vmem>>, vector<1x1xf32>
    tpu.vector_store %arg4[%c0_17, %c0_18], %47 {strides = array<i32>} : memref<1x1xf32, #tpu.memory_space<vmem>>, vector<1x1xf32>,
    %c2_i32 = arith.constant 2 : i32
    %49 = arith.cmpi eq, %arg0, %c2_i32 : i32
    %50 = arith.extui %49 : i1 to i32
    %c0_i32_19 = arith.constant 0 : i32
    %51 = arith.cmpi ne, %50, %c0_i32_19 : i32
    scf.if %51 {
      %c0_20 = arith.constant 0 : index
      %c0_21 = arith.constant 0 : index
      %52 = vector.load %arg4[%c0_20, %c0_21] : memref<1x1xf32, #tpu.memory_space<vmem>>, vector<1x1xf32>
      %cst_22 = arith.constant 5.000000e-02 : f32
      %53 = vector.broadcast %cst_22 : f32 to vector<1x1xf32>
      %54 = arith.mulf %52, %53 : vector<1x1xf32>
      %c0_23 = arith.constant 0 : index
      %c0_24 = arith.constant 0 : index
      %55 = vector.load %arg3[%c0_23, %c0_24] : memref<1x1xf32, #tpu.memory_space<vmem>>, vector<1x1xf32>
      tpu.vector_store %arg3[%c0_23, %c0_24], %54 {strides = array<i32>} : memref<1x1xf32, #tpu.memory_space<vmem>>, vector<1x1xf32>,
    } else {
    }
    return
  }
  func.func @transform_0(%arg0: i32) -> (i32, i32) {
    %c0_i32 = arith.constant 0 : i32
    %c0_i32_0 = arith.constant 0 : i32
    return %arg0, %c0_i32 : i32, i32
  }
  func.func @transform_1(%arg0: i32) -> (i32, i32) {
    %c0_i32 = arith.constant 0 : i32
    %c0_i32_0 = arith.constant 0 : i32
    return %arg0, %c0_i32 : i32, i32
  }
  func.func @transform_2(%arg0: i32) -> (i32, i32) {
    %c0_i32 = arith.constant 0 : i32
    %c0_i32_0 = arith.constant 0 : i32
    %c0_i32_1 = arith.constant 0 : i32
    return %c0_i32, %c0_i32_0 : i32, i32
  }
}

</mosaic_0001>

<bundles_post_ra>
// kernel: tpu_custom_call.1
= control target key start
LH: loop header
LB: loop body
LE: loop exit
PB: predicated region body
PF: predicated region fallthrough
CT: control target
= control target key end

     0   :  { %7 = vsyncpa [#allocation4], 0  ;;  %s359_s9 = smov 0   ;;  %s412_s0 = inlined_call_operand.vmem [shape: f32[20,16], index: 0, kind: input, shape index: {}]   ;;  %s413_s1 = inlined_call_operand.vmem [shape: s32[20,1], index: 1, kind: input, shape index: {}]   ;;  %s414_s2 = inlined_call_operand.hbm [shape: f32[1,1], index: 2, kind: output, shape index: {}]  }
   0x1 LB: > { %s365_s10 = sadd.s32 4294967295, %s339_s9   ;;  %p271_p0 = scmp.ge.s32.totalorder %s339_s9, 1  ;;  %s339_s9 = sphi %s359_s9, %s13_s9  }
   0x2   : > { %p116_p1 = scmp.lt.s32.totalorder %s339_s9, 4 }
   0x4   : > { %p117_p2 = pnand %p271_p0, %p116_p1 }
   0x5   : > { %p136_p3 = scmp.lt.s32.totalorder (!%p117_p2), %s365_s10, 2  ;;  %p274_p4 = scmp.ne.s32.totalorder (!%p117_p2), %s365_s10, 0 }
   0x6   : > { %120 = sbr.rel (%p117_p2) target bundleno = 402 (0x192), region = 28 }
   0xd   : > { %s137_s11 = scalar_select %p136_p3, %s365_s10, 2 }
   0xe   : > { %147 = sbr.rel (%p274_p4) target bundleno = 21 (0x15), region = 32  ;;  %vm148_vm0 = vcmask (!%p274_p4), 0   ;;  %v341_v0 = vmov (!%p274_p4), 0.0  }
   0xf   : > { %s272_s12 = sshll.u32 %s137_s11, 3  ;;  %149 = vst.msk [vmem:[#allocation2] sm:$0x1] (!%p274_p4), %vm148_vm0, %v341_v0 }
  0x10   : > { %s139_s15 = scalar_lea.vmem %s412_s0, %s272_s12  ;;  %s143_s18 = scalar_lea.vmem %s413_s1, %s272_s12 }
  0x15 PF: > { %s275_s19 = sshll.u32 %s365_s10, 3  ;;  %v153_v1 = vlaneseq  ;;  %v342_v3 = vmov 0   ;;  %v150_v5 = vld [vmem:[%s139_s15] sm:$0xff]  ;;  %vm161_vm1 = vcmask 130048   ;;  %vm201_vm4 = vcmask 0   ;;  %p276_p5 = scmp.ne.s32.totalorder %s365_s10, 2 }
  0x16   : > { %v155_v2 = vstv %s275_s19  ;;  %298 = vset.pattern.permute.xlu0 %v342_v3  ;;  %v151_v9 = vld [vmem:[%s143_s18] sm:$0xff] }
  0x17   : > { %v154_v4 = vshrl.u32 %v153_v1, 7  ;;  %v177_v13 = vand.u32 127, %v153_v1  ;;  %v193_v37 = vld [vmem:[#allocation2] sm:$0x1] }
  0x19   : > { %v156_v6 = vadd.s32 %v155_v2, %v154_v4 }
  0x1b   : > { %vm157_vm2 = vcmp.lt.s32.totalorder %v156_v6, 20 }
  0x1c   : > { %v160_v7 = vsel %vm157_vm2, %v150_v5, 0.0 }
  0x1d   : > { %v162_v8 = vsel %vm161_vm1, %v160_v7, -inf }
  0x1e   : > { %163 = vmax.xlane.f32.xlu0 %v162_v8 }
  0x34   : > { %179 = vperm.xlu0 %298, %v151_v9  }
  0xab   : > { %v164_v10 = vpop.xlane.xlu0 %163 }
  0xac   : > { %v165_v11 = vsub.f32 %v160_v7, %v164_v10 }
  0xae   : > { %v166_v12 = vmul.f32 1.442695, %v165_v11  ;;  %v173_v17 = vsel %vm161_vm1, %v165_v11, 0.0 }
  0xb0   : > { %299 = vpow2.f32 %v166_v12 }
  0xb3   : > { %v180_v15 = vpop.permute.xlu0 %179 }
  0xb4   : > { %vm181_vm3 = vcmp.eq.s32.totalorder %v177_v13, %v180_v15 }
  0xb5   : > { %v182_v18 = vsel %vm181_vm3, %v165_v11, 0.0 }
  0xb6   : > { %v183_v19 = vsel %vm161_vm1, %v182_v18, 0.0 }
  0xba   : > { %v300_v14 = vpop.eup %299 }
  0xbb   : > { %v168_v16 = vsel %vm161_vm1, %v300_v14, 0.0 }
  0xbc   : > { %169 = vadd.xlane.f32.xlu1 %v168_v16 }
  0xc0   : > { %174 = vadd.xlane.f32.xlu1 %v173_v17 }
  0xc4   : > { %184 = vadd.xlane.f32.xlu1 %v183_v19 }
 0x149   : > { %v170_v20 = vpop.xlane.xlu1 %169 }
 0x14a   : > { %301 = vlog2.f32 %v170_v20 }
 0x14d   : > { %v175_v21 = vpop.xlane.xlu1 %174 }
 0x151   : > { %v185_v24 = vpop.xlane.xlu1 %184 }
 0x154   : > { %v302_v22 = vpop.eup %301 }
 0x155   : > { %v172_v23 = vmul.f32 0.6931472, %v302_v22 }
 0x157   : > { %v188_v25 = vmul.f32 16.0, %v172_v23  ;;  %v186_v26 = vsub.f32 %v172_v23, %v185_v24 }
 0x159   : > { %v189_v27 = vsub.f32 %v188_v25, %v175_v21  ;;  %v187_v29 = vmul.f32 0.9, %v186_v26 }
 0x15b   : > { %v190_v28 = vmul.f32 0.00625, %v189_v27 }
 0x15d   : > { %v191_v30 = vadd.f32 %v190_v28, %v187_v29 }
 0x15f   : > { %v192_v31 = vsel %vm157_vm2, %v191_v30, 0.0 }
 0x160   : > { %v194_v32 = vrot.slane %v192_v31, 4 }
 0x162   : > { %v195_v33 = vadd.f32 %v194_v32, %v192_v31 }
 0x164   : > { %v196_v34 = vrot.slane %v195_v33, 2 }
 0x166   : > { %v197_v35 = vadd.f32 %v196_v34, %v195_v33 }
 0x168   : > { %v198_v36 = vrot.slane %v197_v35, 1  ;;  %206 = sbr.rel (%p276_p5) target bundleno = 377 (0x179), region = 36 }
 0x16a   : > { %v199_v38 = vadd.f32 %v198_v36, %v197_v35 }
 0x16c   : > { %v200_v39 = vadd.f32 %v199_v38, %v193_v37 }
 0x16e   : > { %202 = vst.msk [vmem:[#allocation2] sm:$0x1] %vm201_vm4, %v200_v39 }
 0x175   : > { %v207_v40 = vld [vmem:[#allocation2] sm:$0x1] }
 0x176   : > { %v208_v41 = vmul.f32 0.05, %v207_v40 }
 0x178   : > { %209 = vst.msk [vmem:[#allocation3] sm:$0x1] %vm201_vm4, %v208_v41 }
 0x179 PF: > { %p285_p6 = scmp.eq.s32.totalorder %s365_s10, 2  ;;  %s343_s20 = smov [#allocation3]  }
 0x17a   : > { %s217_s21 = sshll.u32 %s343_s20, 4  ;;  %s218_s21 = int_to_ptr.vmem [resolvable:$true] %s217_s21 }
 0x17b   : > { %s303_s22 = scalar_lea.vmem %s218_s21, 16  ;;  %s309_s23 = scalar_lea.vmem %s218_s21, 32 }
 0x17c   : > { %p304_p7 = scmp.ne.s32.totalorder %s218_s21, %s303_s22  ;;  %p310_p10 = scmp.lt.s32.totalorder %s218_s21, %s218_s21 }
 0x17d   : > { %p311_p11 = scmp.lt.s32.totalorder %s309_s23, %s303_s22 }
 0x17e   : > { %p305_p8 = pnand %p304_p7, %p285_p6 }
 0x17f   : > { %p312_p12 = por %p311_p11, %p310_p10 }
 0x180   : > { %p306_p9 = pneg %p305_p8 }
 0x182   : > { %p313_p13 = pnand %p312_p12, %p306_p9 }
 0x184   : > { %316 = shalt.err (!%p313_p13)
}
 0x185   : > { %s317_s26 = scalar_lea.hbm %s414_s2, 16 }
 0x186   : > { %p318_p0 = scmp.ne.s32.totalorder %s414_s2, %s317_s26  ;;  %p323_p3 = scmp.lt.u32.totalorder %s317_s26, %s414_s2 }
 0x188   : > { %p319_p1 = pnand %p318_p0, %p285_p6 }
 0x18a   : > { %p320_p2 = pneg %p319_p1 }
 0x18c   : > { %p325_p4 = pnand %p323_p3, %p320_p2 }
 0x18e   : > { %328 = shalt.err (!%p325_p4)
}
 0x18f   : > { %282 = dma.vmem_to_hbm [thread:$0]  (%p285_p6), %s218_s21, 16, %s414_s2, [#allocation4]  }
 0x190   : > { %334 = dma.done.wait (%p285_p6), [#allocation4], 16  }
 0x191   : > { %336 = vsyncadd (%p285_p6), [#allocation4], 4294967280 }
 0x192 PF: > { %s13_s9 = sadd.s32 1, %s339_s9  }
 0x193   : > { %p10_p5 = scmp.ge.s32.totalorder %s13_s9, 5  }
 0x195   :  { %12 = sbr.rel (!%p10_p5) target bundleno = 1 (0x1), region = 66 }
 0x19c   :  { %230 = vsyncpa [#allocation4], 1 }
 0x19d   :  { %232 = vsyncpa [#allocation4 + $0x1], 1 }

</bundles_post_ra>
